<compile_context>
chip_gen: v7x
topology: tpu7x:2x2x1
jax: 0.10.0
libtpu: 0.0.40
codegen_flags: <defaults>
</compile_context>

<pallas_src>
import functools

import jax
import jax.numpy as jnp
from jax.experimental import pallas as pl
from jax.experimental.pallas import tpu as pltpu

EPS = 1e-5
_LANE = 128
_SUBLANE = 8
_TF_MAX = 4096        # lane-tile ceiling (vreg pressure / diminishing returns)
_BYTES_PER_ELEM = 24  # ~6 live f32 copies of a block: 2x in + 2x out bufs + temps


def _round_up(v, m):
    return (v + m - 1) // m * m


def _vmem_plan(budget_bytes=None):
    """(vmem_limit_bytes, per-block working-set budget), per TPU generation.

    v5e/v6e: 128 MiB physical VMEM -> 96 MiB limit, 48 MiB block budget.
    v7x:      64 MiB per TensorCore -> 48 MiB limit, 24 MiB block budget.
    """
    try:
        phys = int(pltpu.get_tpu_info().vmem_capacity_bytes)
    except Exception:   # unknown chip / interpret mode: assume the smallest (v7x)
        phys = 64 << 20
    vmem_limit = min(phys * 3 // 4, 96 << 20)
    budget = vmem_limit // 2 if budget_bytes is None else min(budget_bytes, vmem_limit)
    return vmem_limit, budget


def _feature_tile(f, cap_lanes, hint=None):
    """Lane tile: f itself when f <= 128 (full-dim block), else a multiple of 128."""
    if f <= _LANE:
        return f
    tf = min(cap_lanes, _TF_MAX, _round_up(f, _LANE))
    if hint is not None:
        tf = min(tf, hint)
    return max(_LANE, tf // _LANE * _LANE)


# --------------------------------------------------------------------------- #
# Kernels
# --------------------------------------------------------------------------- #
def _fused_kernel(x_ref, w_ref, b_ref, ms_ref, o_ref, mean_ref, std2_ref, *, inv_n):
    """One (N, TF) feature-column slab: stats over axis 0 + normalize."""
    x = x_ref[...].astype(jnp.float32)            # (N, TF)
    ms = ms_ref[...]                              # (1, TF)

    # Single-pass moments: E[(x - ms*mean)^2] = E[x^2] - ms*(2 - ms)*mean^2.
    mean = jnp.sum(x, axis=0, keepdims=True) * inv_n
    ex2 = jnp.sum(x * x, axis=0, keepdims=True) * inv_n
    std2 = ex2 - (2.0 - ms) * ms * mean * mean

    inv_std = jax.lax.rsqrt(std2 + EPS)           # EUP slot (free vs. VPU)
    # Fold the affine into per-column scale/shift: hot path is a single FMA.
    scale = inv_std * w_ref[...]                  # (1, TF)
    shift = b_ref[...] - (ms * mean) * scale      # (1, TF)

    o_ref[...] = (x * scale + shift).astype(o_ref.dtype)
    mean_ref[...] = mean
    std2_ref[...] = std2


def _stats_kernel(x_ref, sumx_ref, sumsq_ref, *, n, tn):
    """Accumulate per-column sum(x), sum(x^2) over the node (reduction) axis."""
    k = pl.program_id(1)

    @pl.when(k == 0)
    def _():
        sumx_ref[...] = jnp.zeros_like(sumx_ref)
        sumsq_ref[...] = jnp.zeros_like(sumsq_ref)

    x = x_ref[...].astype(jnp.float32)            # (TN, TF)
    if n % tn:  # ragged last node tile: zero out-of-range rows before reducing
        row = jax.lax.broadcasted_iota(jnp.int32, (x.shape[0], 1), 0) + k * tn
        x = jnp.where(row < n, x, 0.0)
    sumx_ref[...] += jnp.sum(x, axis=0, keepdims=True)
    sumsq_ref[...] += jnp.sum(x * x, axis=0, keepdims=True)


def _apply_kernel(x_ref, scale_ref, shift_ref, o_ref):
    """out = x * scale + shift (per-column scale/shift)."""
    x = x_ref[...].astype(jnp.float32)
    o_ref[...] = (x * scale_ref[...] + shift_ref[...]).astype(o_ref.dtype)


# --------------------------------------------------------------------------- #
# Wrapper
# --------------------------------------------------------------------------- #
def graphnorm_forward(x, weight, bias, meanscale, running_mean, running_var,
                      momentum=0.1, *, budget_bytes=None, force_two_pass=False,
                      max_feature_tile=None, max_node_tile=None):
    """Training-mode GraphNorm forward.

    Returns (out, new_running_mean, new_running_var), matching the PyTorch
    module's output and its running-buffer side effects.
    """
    n, f = x.shape
    itemsize = x.dtype.itemsize
    w = weight.astype(jnp.float32).reshape(1, f)
    b = bias.astype(jnp.float32).reshape(1, f)
    ms = meanscale.astype(jnp.float32).reshape(1, f)

    vmem_limit, budget = _vmem_plan(budget_bytes)

    def cparams(sems):
        return pltpu.CompilerParams(dimension_semantics=sems,
                                    vmem_limit_bytes=vmem_limit)

    f_ceil = f if f <= _LANE else _round_up(f, _LANE)
    # How many lane-columns of an (N, *) slab fit in the per-block budget.
    fused_cap = budget // (_BYTES_PER_ELEM * max(n, _SUBLANE))
    use_fused = (not force_two_pass) and fused_cap >= min(f_ceil, 4 * _LANE)

    if use_fused:
        tf = _feature_tile(f, fused_cap, hint=max_feature_tile)
        grid = (pl.cdiv(f, tf),)   # feature axis 'parallel' -> both TCs on v7x
        out, mean2d, std22d = pl.pallas_call(
            functools.partial(_fused_kernel, inv_n=1.0 / n),
            out_shape=(
                jax.ShapeDtypeStruct((n, f), x.dtype),
                jax.ShapeDtypeStruct((1, f), jnp.float32),
                jax.ShapeDtypeStruct((1, f), jnp.float32),
            ),
            grid=grid,
            in_specs=[
                pl.BlockSpec((n, tf), lambda j: (0, j)),
                pl.BlockSpec((1, tf), lambda j: (0, j)),
                pl.BlockSpec((1, tf), lambda j: (0, j)),
                pl.BlockSpec((1, tf), lambda j: (0, j)),
            ],
            out_specs=(
                pl.BlockSpec((n, tf), lambda j: (0, j)),
                pl.BlockSpec((1, tf), lambda j: (0, j)),
                pl.BlockSpec((1, tf), lambda j: (0, j)),
            ),
            compiler_params=cparams(("parallel",)),
            cost_estimate=pl.CostEstimate(
                flops=int(8 * n * f), transcendentals=int(f),
                bytes_accessed=int(2 * n * f * itemsize + 6 * f * 4)),
        )(x, w, b, ms)
        mean = mean2d[0]
        std2 = std22d[0]
    else:
        # ---- Pass 1: per-column sum(x), sum(x^2); node axis is the trailing
        # "arbitrary" reduction axis, accumulated in the resident out block. ----
        tf = _feature_tile(f, cap_lanes=2048, hint=max_feature_tile)
        tn_cap = max(_SUBLANE, budget // (_BYTES_PER_ELEM * tf))
        tn = min(tn_cap, n)
        if max_node_tile is not None:
            tn = min(tn, max_node_tile)
        if tn < n:
            tn = max(_SUBLANE, tn // _SUBLANE * _SUBLANE)   # (8,128) rule
        else:
            tn = n                                          # full-dim block
        grid_f = pl.cdiv(f, tf)
        grid_n = pl.cdiv(n, tn)

        sum_x, sum_sq = pl.pallas_call(
            functools.partial(_stats_kernel, n=n, tn=tn),
            out_shape=(jax.ShapeDtypeStruct((1, f), jnp.float32),
                       jax.ShapeDtypeStruct((1, f), jnp.float32)),
            grid=(grid_f, grid_n),
            in_specs=[pl.BlockSpec((tn, tf), lambda j, k: (k, j))],
            out_specs=(pl.BlockSpec((1, tf), lambda j, k: (0, j)),
                       pl.BlockSpec((1, tf), lambda j, k: (0, j))),
            compiler_params=cparams(("parallel", "arbitrary")),
            cost_estimate=pl.CostEstimate(
                flops=int(4 * n * f), transcendentals=0,
                bytes_accessed=int(n * f * itemsize + 2 * f * 4)),
        )(x)

        inv_n = 1.0 / n
        msf = meanscale.astype(jnp.float32)
        mean = sum_x[0] * inv_n
        std2 = sum_sq[0] * inv_n - (2.0 - msf) * msf * mean * mean
        inv_std = jax.lax.rsqrt(std2 + EPS)
        scale = (inv_std * weight.astype(jnp.float32)).reshape(1, f)
        shift = (bias.astype(jnp.float32) - msf * mean * scale[0]).reshape(1, f)

        # ---- Pass 2: elementwise apply (one read + one write of x). ----
        out = pl.pallas_call(
            _apply_kernel,
            out_shape=jax.ShapeDtypeStruct((n, f), x.dtype),
            grid=(grid_n, grid_f),
            in_specs=[pl.BlockSpec((tn, tf), lambda i, j: (i, j)),
                      pl.BlockSpec((1, tf), lambda i, j: (0, j)),
                      pl.BlockSpec((1, tf), lambda i, j: (0, j))],
            out_specs=pl.BlockSpec((tn, tf), lambda i, j: (i, j)),
            compiler_params=cparams(("parallel", "parallel")),
            cost_estimate=pl.CostEstimate(
                flops=int(2 * n * f), transcendentals=0,
                bytes_accessed=int(2 * n * f * itemsize + 2 * f * 4)),
        )(x, scale, shift)

    # Running-buffer EMA updates (plain-JAX glue; matches the torch.no_grad block).
    # TODO(synk): fold the EMA into the kernel as extra (1, TF) rows if launch
    # overhead ever matters for tiny N*F.  NOTE: n == 1 divides by zero in the
    # unbiased n/(n-1) factor, same as PyTorch.
    new_running_mean = (1.0 - momentum) * running_mean + momentum * mean
    new_running_var = (1.0 - momentum) * running_var + momentum * (n / (n - 1.0)) * std2
    return out, new_running_mean, new_running_var


# --------------------------------------------------------------------------- #
# Reference + self-test
# --------------------------------------------------------------------------- #
def graphnorm_reference(x, weight, bias, meanscale):
    mean = jnp.mean(x, axis=0)
    std2 = jnp.mean((x - meanscale * mean) ** 2, axis=0)
    out = (x - meanscale * mean) * jax.lax.rsqrt(std2 + EPS)
    return out * weight + bias, mean, std2


def _run_case(key, n, f, momentum=0.1, **kwargs):
    kx, kw, kb, km = jax.random.split(key, 4)
    x = jax.random.normal(kx, (n, f), dtype=jnp.float32)
    # reset_parameters(): weight=1, bias=0, meanscale=1 (perturbed so the test
    # is non-trivial); running_mean=0, running_var=1.
    weight = 1.0 + 0.1 * jax.random.normal(kw, (f,), jnp.float32)
    bias = 0.1 * jax.random.normal(kb, (f,), jnp.float32)
    meanscale = 1.0 + 0.1 * jax.random.normal(km, (f,), jnp.float32)
    running_mean = jnp.zeros((f,), jnp.float32)
    running_var = jnp.ones((f,), jnp.float32)

    out, rm, rv = graphnorm_forward(
        x, weight, bias, meanscale, running_mean, running_var, momentum, **kwargs)
    out = jax.block_until_ready(out)
    rm = jax.block_until_ready(rm)
    rv = jax.block_until_ready(rv)

    ref_out, ref_mean, ref_std2 = graphnorm_reference(x, weight, bias, meanscale)
    ref_rm = (1.0 - momentum) * running_mean + momentum * ref_mean
    ref_rv = (1.0 - momentum) * running_var + momentum * (n / (n - 1.0)) * ref_std2

    assert jnp.allclose(out, ref_out, atol=5e-5, rtol=5e-5), "output mismatch"
    assert jnp.allclose(rm, ref_rm, atol=5e-5, rtol=5e-5), "running_mean mismatch"
    assert jnp.allclose(rv, ref_rv, atol=5e-5, rtol=5e-5), "running_var mismatch"


if __name__ == "__main__":
    key = jax.random.PRNGKey(0)
    k1, k2, k3 = jax.random.split(key, 3)

    # Fused path, F < 128: full-dim lane block, single grid step.
    _run_case(k1, n=8, f=32)

    # Fused path, several feature tiles with a ragged last tile (F % 128 != 0)
    # -- no pad of x; Pallas masks the boundary block.
    _run_case(k2, n=16, f=1000, max_feature_tile=256)

    # Two-pass (stats-reduce + apply) large-N path, forced at a small shape:
    # ragged node and feature tiles exercise the in-kernel row mask.
    _run_case(k3, n=300, f=160, force_two_pass=True,
              max_feature_tile=128, max_node_tile=64)

    print("KERNEL_OK")
</pallas_src>

<mosaic_0001>
module attributes {stable_mosaic.version = 11 : i64} {
  func.func @_fused_kernel(%arg0: i32, %arg1: memref<8x32xf32, #tpu.memory_space<vmem>>, %arg2: memref<1x32xf32, #tpu.memory_space<vmem>>, %arg3: memref<1x32xf32, #tpu.memory_space<vmem>>, %arg4: memref<1x32xf32, #tpu.memory_space<vmem>>, %arg5: memref<8x32xf32, #tpu.memory_space<vmem>>, %arg6: memref<1x32xf32, #tpu.memory_space<vmem>>, %arg7: memref<1x32xf32, #tpu.memory_space<vmem>>) attributes {dimension_semantics = [#tpu.dimension_semantics<parallel>], iteration_bounds = array<i64: 1>, scalar_prefetch = 0 : i64, scratch_operands = 0 : i64, tpu.core_type = #tpu.core_type<tc>, window_params = [{transform_indices = @transform_0, window_bounds = array<i64: 8, 32>}, {transform_indices = @transform_1, window_bounds = array<i64: 1, 32>}, {transform_indices = @transform_2, window_bounds = array<i64: 1, 32>}, {transform_indices = @transform_3, window_bounds = array<i64: 1, 32>}, {transform_indices = @transform_4, window_bounds = array<i64: 8, 32>}, {transform_indices = @transform_5, window_bounds = array<i64: 1, 32>}, {transform_indices = @transform_6, window_bounds = array<i64: 1, 32>}]} {
    %c0 = arith.constant 0 : index
    %c0_0 = arith.constant 0 : index
    %0 = vector.load %arg1[%c0, %c0_0] : memref<8x32xf32, #tpu.memory_space<vmem>>, vector<8x32xf32>
    %c0_1 = arith.constant 0 : index
    %c0_2 = arith.constant 0 : index
    %1 = vector.load %arg4[%c0_1, %c0_2] : memref<1x32xf32, #tpu.memory_space<vmem>>, vector<1x32xf32>
    %cst = arith.constant dense<0.000000e+00> : vector<32xf32>
    %2 = vector.multi_reduction <add>, %0, %cst [0] : vector<8x32xf32> to vector<32xf32>
    %3 = vector.shape_cast %2 : vector<32xf32> to vector<1x32xf32>
    %cst_3 = arith.constant 1.250000e-01 : f32
    %4 = vector.broadcast %cst_3 : f32 to vector<1x32xf32>
    %5 = arith.mulf %3, %4 : vector<1x32xf32>
    %6 = arith.mulf %0, %0 : vector<8x32xf32>
    %cst_4 = arith.constant dense<0.000000e+00> : vector<32xf32>
    %7 = vector.multi_reduction <add>, %6, %cst_4 [0] : vector<8x32xf32> to vector<32xf32>
    %8 = vector.shape_cast %7 : vector<32xf32> to vector<1x32xf32>
    %cst_5 = arith.constant 1.250000e-01 : f32
    %9 = vector.broadcast %cst_5 : f32 to vector<1x32xf32>
    %10 = arith.mulf %8, %9 : vector<1x32xf32>
    %cst_6 = arith.constant 2.000000e+00 : f32
    %11 = vector.broadcast %cst_6 : f32 to vector<1x32xf32>
    %12 = arith.subf %11, %1 : vector<1x32xf32>
    %13 = arith.mulf %12, %1 : vector<1x32xf32>
    %14 = arith.mulf %13, %5 : vector<1x32xf32>
    %15 = arith.mulf %14, %5 : vector<1x32xf32>
    %16 = arith.subf %10, %15 : vector<1x32xf32>
    %cst_7 = arith.constant 9.99999974E-6 : f32
    %17 = vector.broadcast %cst_7 : f32 to vector<1x32xf32>
    %18 = arith.addf %16, %17 : vector<1x32xf32>
    %19 = math.rsqrt %18 : vector<1x32xf32>
    %c0_8 = arith.constant 0 : index
    %c0_9 = arith.constant 0 : index
    %20 = vector.load %arg2[%c0_8, %c0_9] : memref<1x32xf32, #tpu.memory_space<vmem>>, vector<1x32xf32>
    %21 = arith.mulf %19, %20 : vector<1x32xf32>
    %c0_10 = arith.constant 0 : index
    %c0_11 = arith.constant 0 : index
    %22 = vector.load %arg3[%c0_10, %c0_11] : memref<1x32xf32, #tpu.memory_space<vmem>>, vector<1x32xf32>
    %23 = arith.mulf %1, %5 : vector<1x32xf32>
    %24 = arith.mulf %23, %21 : vector<1x32xf32>
    %25 = arith.subf %22, %24 : vector<1x32xf32>
    %26 = vector.broadcast %21 : vector<1x32xf32> to vector<8x32xf32>
    %27 = arith.mulf %0, %26 : vector<8x32xf32>
    %28 = vector.broadcast %25 : vector<1x32xf32> to vector<8x32xf32>
    %29 = arith.addf %27, %28 : vector<8x32xf32>
    %c0_12 = arith.constant 0 : index
    %c0_13 = arith.constant 0 : index
    %30 = vector.load %arg5[%c0_12, %c0_13] : memref<8x32xf32, #tpu.memory_space<vmem>>, vector<8x32xf32>
    tpu.vector_store %arg5[%c0_12, %c0_13], %29 {strides = array<i32>} : memref<8x32xf32, #tpu.memory_space<vmem>>, vector<8x32xf32>,
    %c0_14 = arith.constant 0 : index
    %c0_15 = arith.constant 0 : index
    %31 = vector.load %arg6[%c0_14, %c0_15] : memref<1x32xf32, #tpu.memory_space<vmem>>, vector<1x32xf32>
    tpu.vector_store %arg6[%c0_14, %c0_15], %5 {strides = array<i32>} : memref<1x32xf32, #tpu.memory_space<vmem>>, vector<1x32xf32>,
    %c0_16 = arith.constant 0 : index
    %c0_17 = arith.constant 0 : index
    %32 = vector.load %arg7[%c0_16, %c0_17] : memref<1x32xf32, #tpu.memory_space<vmem>>, vector<1x32xf32>
    tpu.vector_store %arg7[%c0_16, %c0_17], %16 {strides = array<i32>} : memref<1x32xf32, #tpu.memory_space<vmem>>, vector<1x32xf32>,
    return
  }
  func.func @transform_0(%arg0: i32) -> (i32, i32) {
    %c0_i32 = arith.constant 0 : i32
    %c0_i32_0 = arith.constant 0 : i32
    return %c0_i32, %arg0 : i32, i32
  }
  func.func @transform_1(%arg0: i32) -> (i32, i32) {
    %c0_i32 = arith.constant 0 : i32
    %c0_i32_0 = arith.constant 0 : i32
    return %c0_i32, %arg0 : i32, i32
  }
  func.func @transform_2(%arg0: i32) -> (i32, i32) {
    %c0_i32 = arith.constant 0 : i32
    %c0_i32_0 = arith.constant 0 : i32
    return %c0_i32, %arg0 : i32, i32
  }
  func.func @transform_3(%arg0: i32) -> (i32, i32) {
    %c0_i32 = arith.constant 0 : i32
    %c0_i32_0 = arith.constant 0 : i32
    return %c0_i32, %arg0 : i32, i32
  }
  func.func @transform_4(%arg0: i32) -> (i32, i32) {
    %c0_i32 = arith.constant 0 : i32
    %c0_i32_0 = arith.constant 0 : i32
    return %c0_i32, %arg0 : i32, i32
  }
  func.func @transform_5(%arg0: i32) -> (i32, i32) {
    %c0_i32 = arith.constant 0 : i32
    %c0_i32_0 = arith.constant 0 : i32
    return %c0_i32, %arg0 : i32, i32
  }
  func.func @transform_6(%arg0: i32) -> (i32, i32) {
    %c0_i32 = arith.constant 0 : i32
    %c0_i32_0 = arith.constant 0 : i32
    return %c0_i32, %arg0 : i32, i32
  }
}

</mosaic_0001>

<bundles_post_ra>
// kernel: tpu_custom_call.1
= control target key start
LH: loop header
LB: loop body
LE: loop exit
PB: predicated region body
PF: predicated region fallthrough
CT: control target
= control target key end

     0   :  { %12 = vsyncpa [#allocation3], 0  ;;  %s332_s0 = inlined_call_operand.hbm [shape: f32[8,32], index: 0, kind: input, shape index: {}]   ;;  %s333_s1 = inlined_call_operand.vmem [shape: f32[1,32], index: 1, kind: input, shape index: {}]   ;;  %s334_s2 = inlined_call_operand.vmem [shape: f32[1,32], index: 2, kind: input, shape index: {}]   ;;  %s335_s3 = inlined_call_operand.vmem [shape: f32[1,32], index: 3, kind: input, shape index: {}]   ;;  %s336_s4 = inlined_call_operand.hbm [shape: f32[8,32], index: 4, kind: output, shape index: {0}]   ;;  %s337_s5 = inlined_call_operand.hbm [shape: f32[1,32], index: 5, kind: output, shape index: {1}]   ;;  %s338_s6 = inlined_call_operand.hbm [shape: f32[1,32], index: 6, kind: output, shape index: {2}]  }
   0x1   :  { %13 = vsyncpa [#allocation4], 0 }
   0x2   :  { %14 = vsyncpa [#allocation7], 0  ;;  %s225_s21 = smov [#allocation2]   ;;  %s131_s25 = scalar_lea.hbm %s332_s0, 128 }
   0x3   :  { %s21_s22 = sshll.u32 %s225_s21, 4  ;;  %p132_p0 = scmp.ne.s32.totalorder %s332_s0, %s131_s25  ;;  %s22_s22 = int_to_ptr.vmem [resolvable:$true] %s21_s22 }
   0x4   :  { %p135_p1 = scmp.lt.u32.totalorder %s131_s25, %s332_s0 }
   0x6   :  { %p137_p2 = pnand %p135_p1, %p132_p0 }
   0x8   :  { %140 = shalt.err (!%p137_p2)
}
   0x9   :  { %s141_s30 = scalar_lea.vmem %s22_s22, 128  ;;  %p146_p4 = scmp.lt.s32.totalorder %s22_s22, %s22_s22 }
   0xa   :  { %p142_p3 = scmp.ne.s32.totalorder %s22_s22, %s141_s30  ;;  %p147_p5 = scmp.lt.s32.totalorder %s141_s30, %s141_s30 }
   0xc   :  { %p148_p6 = por %p147_p5, %p146_p4 }
   0xe   :  { %p149_p7 = pnand %p148_p6, %p142_p3 }
  0x10   :  { %152 = shalt.err (!%p149_p7)
}
  0x11   :  { %24 = dma.hbm_to_vmem [thread:$0]  %s332_s0, 128, %s22_s22, [#allocation3]  }
  0x12   :  { %219 = dma.done.wait [#allocation3], 128  }
  0x13   :  { %220 = vsyncadd [#allocation3], 4294967168  ;;  %vm36_vm0 = vcmask 261120   ;;  %v276_v0 = vld [vmem:[#allocation2] sm:$0xff]  ;;  %s226_s0 = smov [#allocation6]   ;;  %vm80_vm1 = vcmask 253952  }
  0x14   :  { %v37_v1 = vsel %vm36_vm0, %v276_v0, 0.0  ;;  %v45_v2 = vmul.f32 %v276_v0, %v276_v0  ;;  %v35_v7 = vld [vmem:[%s335_s3] sm:$0x1]  ;;  %s99_s11 = sshll.u32 %s226_s0, 4  ;;  %s227_s3 = smov [#allocation8]   ;;  %s100_s11 = int_to_ptr.vmem [resolvable:$true] %s99_s11 }
  0x15   :  { %v38_v3 = vrot.slane %v37_v1, 4  ;;  %v54_v12 = vsub.f32 2.0, %v35_v7  ;;  %s109_s12 = sshll.u32 %s227_s3, 4  ;;  %s153_s13 = scalar_lea.vmem %s100_s11, 16  ;;  %s110_s12 = int_to_ptr.vmem [resolvable:$true] %s109_s12 }
  0x16   :  { %v46_v4 = vsel %vm36_vm0, %v45_v2, 0.0  ;;  %p154_p8 = scmp.ne.s32.totalorder %s100_s11, %s153_s13  ;;  %s157_s14 = scalar_lea.vmem %s100_s11, 32 }
  0x17   :  { %v39_v5 = vadd.f32 %v38_v3, %v37_v1  ;;  %v47_v6 = vrot.slane %v46_v4, 4  ;;  %v55_v17 = vmul.f32 %v54_v12, %v35_v7  ;;  %p158_p9 = scmp.lt.s32.totalorder %s100_s11, %s100_s11  ;;  %p159_p10 = scmp.lt.s32.totalorder %s157_s14, %s153_s13 }
  0x19   :  { %v40_v8 = vrot.slane %v39_v5, 2  ;;  %v48_v9 = vadd.f32 %v47_v6, %v46_v4  ;;  %p160_p11 = por %p159_p10, %p158_p9 }
  0x1b   :  { %v41_v10 = vadd.f32 %v40_v8, %v39_v5  ;;  %v49_v11 = vrot.slane %v48_v9, 2  ;;  %p161_p12 = pnand %p160_p11, %p154_p8 }
  0x1d   :  { %v42_v13 = vrot.slane %v41_v10, 1  ;;  %v50_v14 = vadd.f32 %v49_v11, %v48_v9 }
  0x1f   :  { %v43_v15 = vadd.f32 %v42_v13, %v41_v10  ;;  %v51_v16 = vrot.slane %v50_v14, 1 }
  0x21   :  { %v44_v18 = vmul.f32 0.125, %v43_v15  ;;  %v52_v19 = vadd.f32 %v51_v16, %v50_v14 }
  0x23   :  { %v53_v20 = vmul.f32 0.125, %v52_v19  ;;  %81 = vst.msk [vmem:[#allocation6] sm:$0x1] %vm80_vm1, %v44_v18  ;;  %v56_v21 = vmul.f32 %v55_v17, %v44_v18 }
  0x24   :  { %164 = shalt.err (!%p161_p12)
}
  0x25   :  { %s165_s17 = scalar_lea.hbm %s337_s5, 16 }
  0x26   :  { %p166_p13 = scmp.ne.s32.totalorder %s337_s5, %s165_s17  ;;  %p169_p0 = scmp.lt.u32.totalorder %s165_s17, %s337_s5 }
  0x28   :  { %p171_p1 = pnand %p169_p0, %p166_p13 }
  0x2a   :  { %174 = shalt.err (!%p171_p1)
}
  0x2b   :  { %102 = dma.vmem_to_hbm [thread:$0]  %s100_s11, 16, %s337_s5, [#allocation7]   ;;  %v57_v22 = vmul.f32 %v56_v21, %v44_v18 }
  0x2c   :  { %s175_s24 = scalar_lea.vmem %s110_s12, 16  ;;  %s179_s25 = scalar_lea.vmem %s110_s12, 32 }
  0x2d   :  { %v58_v23 = vsub.f32 %v53_v20, %v57_v22  ;;  %p176_p2 = scmp.ne.s32.totalorder %s110_s12, %s175_s24  ;;  %p180_p3 = scmp.lt.s32.totalorder %s110_s12, %s110_s12 }
  0x2e   :  { %p181_p4 = scmp.lt.s32.totalorder %s179_s25, %s175_s24 }
  0x2f   :  { %v59_v24 = vadd.f32 1e-05, %v58_v23  ;;  %82 = vst.msk [vmem:[#allocation8] sm:$0x1] %vm80_vm1, %v58_v23 }
  0x30   :  { %p182_p5 = por %p181_p4, %p180_p3 }
  0x32   :  { %p183_p6 = pnand %p182_p5, %p176_p2 }
  0x34   :  { %186 = shalt.err (!%p183_p6)
}
  0x35   :  { %s187_s28 = scalar_lea.hbm %s338_s6, 16 }
  0x36   :  { %p188_p7 = scmp.ne.s32.totalorder %s338_s6, %s187_s28  ;;  %p191_p8 = scmp.lt.u32.totalorder %s187_s28, %s338_s6 }
  0x38   :  { %p193_p9 = pnand %p191_p8, %p188_p7 }
  0x3a   :  { %196 = shalt.err (!%p193_p9)
}
  0x3b   :  { %112 = dma.vmem_to_hbm [thread:$0]  %s110_s12, 16, %s338_s6, [#allocation7]   ;;  %129 = vrsqrt.f32 %v59_v24  ;;  %v67_v25 = vlaneseq  ;;  %v61_v27 = vld [vmem:[%s333_s1] sm:$0x1]  ;;  %v64_v28 = vmul.f32 %v44_v18, %v35_v7 }
  0x3c   :  { %v63_v32 = vld [vmem:[%s334_s2] sm:$0x1]  ;;  %s228_s6 = smov [#allocation5]  }
  0x3d   :  { %v68_v26 = vshrl.u32 %v67_v25, 7  ;;  %s89_s12 = sshll.u32 %s228_s6, 4  ;;  %s90_s12 = int_to_ptr.vmem [resolvable:$true] %s89_s12 }
  0x3e   :  { %s197_s1 = scalar_lea.vmem %s90_s12, 128  ;;  %p202_p11 = scmp.lt.s32.totalorder %s90_s12, %s90_s12 }
  0x3f   :  { %v69_v29 = vsub.s32 0, %v68_v26  ;;  %p198_p10 = scmp.ne.s32.totalorder %s90_s12, %s197_s1  ;;  %p203_p12 = scmp.lt.s32.totalorder %s197_s1, %s197_s1 }
  0x41   :  { %p204_p13 = por %p203_p12, %p202_p11 }
  0x43   :  { %p205_p0 = pnand %p204_p13, %p198_p10 }
  0x45   :  { %v130_v30 = vpop.eup %129 }
  0x46   :  { %v62_v31 = vmul.f32 %v130_v30, %v61_v27 }
  0x48   :  { %v65_v33 = vmul.f32 %v64_v28, %v62_v31  ;;  %v70_v34 = vrot.slane %v62_v31, %v69_v29 }
  0x4a   :  { %v66_v35 = vsub.f32 %v63_v32, %v65_v33  ;;  %v71_v36 = vmul.f32 %v70_v34, %v276_v0 }
  0x4c   :  { %v76_v37 = vrot.slane %v66_v35, %v69_v29 }
  0x4e   :  { %v78_v38 = vadd.f32 %v76_v37, %v71_v36 }
  0x50   :  { %79 = vst.msk [vmem:[#allocation5] sm:$0xff] %vm36_vm0, %v78_v38 }
  0x51   :  { %208 = shalt.err (!%p205_p0)
}
  0x52   :  { %s209_s14 = scalar_lea.hbm %s336_s4, 128 }
  0x53   :  { %p210_p1 = scmp.ne.s32.totalorder %s336_s4, %s209_s14  ;;  %p213_p2 = scmp.lt.u32.totalorder %s209_s14, %s336_s4 }
  0x55   :  { %p215_p3 = pnand %p213_p2, %p210_p1 }
  0x57   :  { %218 = shalt.err (!%p215_p3)
}
  0x58   :  { %92 = dma.vmem_to_hbm [thread:$0]  %s90_s12, 128, %s336_s4, [#allocation4]  }
  0x59   :  { %221 = dma.done.wait [#allocation4], 128  }
  0x5a   :  { %222 = vsyncadd [#allocation4], 4294967168 }
  0x5b   :  { %223 = dma.done.wait [#allocation7], 32  }
  0x5c   :  { %224 = vsyncadd [#allocation7], 4294967264 }
  0x5d   :  { %122 = vsyncpa [#allocation3], 1 }
  0x5e   :  { %123 = vsyncpa [#allocation4], 1 }
  0x5f   :  { %124 = vsyncpa [#allocation7], 1 }

</bundles_post_ra>
